<compile_context>
chip_gen: v7x
topology: tpu7x:2x2x1
jax: 0.10.0
libtpu: 0.0.40
codegen_flags: <defaults>
</compile_context>

<pallas_src>
import functools
import math

import jax
import jax.numpy as jnp
from jax.experimental import pallas as pl
from jax.experimental.pallas import tpu as pltpu

BN_EPS = 1e-5
_F32 = jnp.float32
_VMEM_LIMIT = 32 * 1024 * 1024  # fits v5e/v6e and v7x scoped VMEM


def _round_up(x, m):
    return ((x + m - 1) // m) * m


def _apply_act(y, act):
    if act == "relu":
        return jnp.maximum(y, 0.0)
    if act == "relu6":
        return jnp.clip(y, 0.0, 6.0)
    return y


def _mosaic_params():
    return pltpu.CompilerParams(
        dimension_semantics=("parallel",),
        vmem_limit_bytes=_VMEM_LIMIT,
    )


# ----------------------------- pointwise matmul -----------------------------

def _pw_kernel(x_ref, w_ref, s_ref, b_ref, o_ref, *, act):
    """y = act((x @ w) * scale + bias) on one (tm, Cout) tile."""
    y = jnp.dot(x_ref[...], w_ref[...], preferred_element_type=jnp.float32)
    y = y * s_ref[...] + b_ref[...]
    o_ref[...] = _apply_act(y, act).astype(o_ref.dtype)


def pw_conv(x2d, w_io, scale, bias, act="none"):
    """Pointwise conv as a tiled matmul (M, Cin) @ (Cin, Cout), fused BN + act."""
    M, Cin = x2d.shape
    Cout = w_io.shape[1]
    # 8-row granularity for small layers; 256-row tiles for the bigger ones.
    tm = 256 if M > 256 else max(8, _round_up(M, 8))
    Mp = _round_up(M, tm)
    xp = jnp.pad(x2d, ((0, Mp - M), (0, 0))) if Mp != M else x2d
    out = pl.pallas_call(
        functools.partial(_pw_kernel, act=act),
        out_shape=jax.ShapeDtypeStruct((Mp, Cout), _F32),
        grid_spec=pltpu.PrefetchScalarGridSpec(
            num_scalar_prefetch=0,
            grid=(Mp // tm,),
            in_specs=[
                pl.BlockSpec((tm, Cin), lambda i: (i, 0)),
                pl.BlockSpec((Cin, Cout), lambda i: (0, 0)),
                pl.BlockSpec((1, Cout), lambda i: (0, 0)),
                pl.BlockSpec((1, Cout), lambda i: (0, 0)),
            ],
            out_specs=pl.BlockSpec((tm, Cout), lambda i: (i, 0)),
        ),
        compiler_params=_mosaic_params(),
    )(xp, w_io, scale.reshape(1, Cout), bias.reshape(1, Cout))
    return out[:M] if Mp != M else out


def conv1x1(x, w_io, scale, bias, act="none"):
    N, H, W, Cin = x.shape
    Cout = w_io.shape[1]
    y = pw_conv(x.reshape(N * H * W, Cin), w_io, scale, bias, act)
    return y.reshape(N, H, W, Cout)


# --------------------- fused inverted residual (stride 1) -------------------

def _ir_kernel_s1(*refs, H, W, has_expand, use_res):
    """expand 1x1 -> dw3x3(s1,p1) -> proj 1x1 [+residual], all in VMEM."""
    if has_expand:
        (x_ref, we_ref, se_ref, be_ref, wd_ref, sd_ref, bd_ref,
         wp_ref, sp_ref, bp_ref, o_ref, pad_ref, y_ref) = refs
    else:
        (x_ref, wd_ref, sd_ref, bd_ref,
         wp_ref, sp_ref, bp_ref, o_ref, pad_ref, y_ref) = refs
    hid = wd_ref.shape[1]

    x2 = x_ref[0]                                   # (HWp, Cin)
    if has_expand:
        h = jnp.dot(x2, we_ref[...], preferred_element_type=jnp.float32)
        h = jnp.clip(h * se_ref[...] + be_ref[...], 0.0, 6.0)
    else:
        h = x2

    # scatter the expanded activation into a zero-padded (H+2, W+2, hid) image
    pad_ref[...] = jnp.zeros(pad_ref.shape, jnp.float32)
    for i in range(H):
        pad_ref[i + 1, 1:W + 1, :] = h[i * W:(i + 1) * W, :]

    # depthwise 3x3: 3 kw-shifted views (loaded once), kh shifts on the cheap leading axis
    acc = jnp.zeros((H, W, hid), jnp.float32)
    for kw in range(3):
        v = pad_ref[:, kw:kw + W, :]                # (H+2, W, hid)
        for kh in range(3):
            acc = acc + v[kh:kh + H] * wd_ref[kh * 3 + kw, :]
    acc = jnp.clip(acc * sd_ref[0, :] + bd_ref[0, :], 0.0, 6.0)

    # re-flatten through a 2D scratch so the projection is a plain MXU matmul
    y_ref[...] = jnp.zeros(y_ref.shape, jnp.float32)
    for i in range(H):
        y_ref[i * W:(i + 1) * W, :] = acc[i]

    y = jnp.dot(y_ref[...], wp_ref[...], preferred_element_type=jnp.float32)
    y = y * sp_ref[...] + bp_ref[...]
    if use_res:
        y = y + x2
    o_ref[0] = y.astype(o_ref.dtype)


def fused_ir_s1(x, p):
    N, H, W, Cin = x.shape
    wd, sd, bd = p["dw"]
    wp, sp, bp = p["proj"]
    hid = wd.shape[1]
    Cout = wp.shape[1]
    HW = H * W
    HWp = max(8, _round_up(HW, 8))

    x2 = x.reshape(N, HW, Cin)
    if HWp != HW:
        x2 = jnp.pad(x2, ((0, 0), (0, HWp - HW), (0, 0)))

    def cspec(a, b):
        return pl.BlockSpec((a, b), lambda n: (0, 0))

    args = [x2]
    in_specs = [pl.BlockSpec((1, HWp, Cin), lambda n: (n, 0, 0))]
    has_expand = p["expand"] is not None
    if has_expand:
        we, se, be = p["expand"]
        args += [we, se.reshape(1, hid), be.reshape(1, hid)]
        in_specs += [cspec(Cin, hid), cspec(1, hid), cspec(1, hid)]
    args += [wd, sd.reshape(1, hid), bd.reshape(1, hid),
             wp, sp.reshape(1, Cout), bp.reshape(1, Cout)]
    in_specs += [cspec(9, hid), cspec(1, hid), cspec(1, hid),
                 cspec(hid, Cout), cspec(1, Cout), cspec(1, Cout)]

    out = pl.pallas_call(
        functools.partial(_ir_kernel_s1, H=H, W=W,
                          has_expand=has_expand, use_res=p["use_res"]),
        out_shape=jax.ShapeDtypeStruct((N, HWp, Cout), _F32),
        grid_spec=pltpu.PrefetchScalarGridSpec(
            num_scalar_prefetch=0,
            grid=(N,),
            in_specs=in_specs,
            out_specs=pl.BlockSpec((1, HWp, Cout), lambda n: (n, 0, 0)),
            scratch_shapes=[pltpu.VMEM((H + 2, W + 2, hid), _F32),
                            pltpu.VMEM((HWp, hid), _F32)],
        ),
        compiler_params=_mosaic_params(),
    )(*args)
    return out[:, :HW, :].reshape(N, H, W, Cout)


# --------------------- fused inverted residual (stride 2) -------------------

def _ir_kernel_s2(*refs, Hq, Wq, Ho, Wo, has_expand):
    """expand 1x1 -> dw3x3(s2,p1) -> proj 1x1, input pre-split into 2x2 parity phases."""
    if has_expand:
        (x_ref, we_ref, se_ref, be_ref, wd_ref, sd_ref, bd_ref,
         wp_ref, sp_ref, bp_ref, o_ref, ph_ref, y_ref) = refs
    else:
        (x_ref, wd_ref, sd_ref, bd_ref,
         wp_ref, sp_ref, bp_ref, o_ref, ph_ref, y_ref) = refs
    hid = wd_ref.shape[1]

    x2 = x_ref[0]                                   # (M2p, Cin), rows = (a,b,hq,wq)
    if has_expand:
        # BN-folded bias is exactly 0 here, so the padded (zero) pixels stay zero.
        h = jnp.dot(x2, we_ref[...], preferred_element_type=jnp.float32)
        h = jnp.clip(h * se_ref[...] + be_ref[...], 0.0, 6.0)
    else:
        h = x2

    # scatter the 4 row/column parity phases into a (2, 2, Hq, Wq, hid) scratch
    for a in range(2):
        for b in range(2):
            base = (a * 2 + b) * Hq * Wq
            for r in range(Hq):
                ph_ref[a, b, r, :, :] = h[base + r * Wq: base + (r + 1) * Wq, :]

    # stride-2 depthwise 3x3: every tap is an un-strided slice of one phase
    acc = jnp.zeros((Ho, Wo, hid), jnp.float32)
    for kh in range(3):
        for kw in range(3):
            a, b = kh % 2, kw % 2
            r0, c0 = kh // 2, kw // 2
            tap = ph_ref[a, b, r0:r0 + Ho, c0:c0 + Wo, :]
            acc = acc + tap * wd_ref[kh * 3 + kw, :]
    acc = jnp.clip(acc * sd_ref[0, :] + bd_ref[0, :], 0.0, 6.0)

    y_ref[...] = jnp.zeros(y_ref.shape, jnp.float32)
    for i in range(Ho):
        y_ref[i * Wo:(i + 1) * Wo, :] = acc[i]

    y = jnp.dot(y_ref[...], wp_ref[...], preferred_element_type=jnp.float32)
    y = y * sp_ref[...] + bp_ref[...]
    o_ref[0] = y.astype(o_ref.dtype)               # no residual on stride-2 blocks


def fused_ir_s2(x, p):
    N, H, W, Cin = x.shape
    wd, sd, bd = p["dw"]
    wp, sp, bp = p["proj"]
    hid = wd.shape[1]
    Cout = wp.shape[1]
    Hq, Wq = (H + 2) // 2, (W + 2) // 2
    Ho, Wo = H // 2, W // 2

    # pad + split into 2x2 parity phases in XLA (tiny pre-expansion tensor), then flatten
    xp = jnp.pad(x, ((0, 0), (1, 1), (1, 1), (0, 0)))
    xph = xp.reshape(N, Hq, 2, Wq, 2, Cin).transpose(0, 2, 4, 1, 3, 5)
    xph = xph.reshape(N, 4 * Hq * Wq, Cin)
    M2 = 4 * Hq * Wq
    M2p = _round_up(M2, 8)
    if M2p != M2:
        xph = jnp.pad(xph, ((0, 0), (0, M2p - M2), (0, 0)))
    OW = Ho * Wo
    OWp = max(8, _round_up(OW, 8))

    def cspec(a, b):
        return pl.BlockSpec((a, b), lambda n: (0, 0))

    args = [xph]
    in_specs = [pl.BlockSpec((1, M2p, Cin), lambda n: (n, 0, 0))]
    has_expand = p["expand"] is not None
    if has_expand:
        we, se, be = p["expand"]
        args += [we, se.reshape(1, hid), be.reshape(1, hid)]
        in_specs += [cspec(Cin, hid), cspec(1, hid), cspec(1, hid)]
    args += [wd, sd.reshape(1, hid), bd.reshape(1, hid),
             wp, sp.reshape(1, Cout), bp.reshape(1, Cout)]
    in_specs += [cspec(9, hid), cspec(1, hid), cspec(1, hid),
                 cspec(hid, Cout), cspec(1, Cout), cspec(1, Cout)]

    out = pl.pallas_call(
        functools.partial(_ir_kernel_s2, Hq=Hq, Wq=Wq, Ho=Ho, Wo=Wo,
                          has_expand=has_expand),
        out_shape=jax.ShapeDtypeStruct((N, OWp, Cout), _F32),
        grid_spec=pltpu.PrefetchScalarGridSpec(
            num_scalar_prefetch=0,
            grid=(N,),
            in_specs=in_specs,
            out_specs=pl.BlockSpec((1, OWp, Cout), lambda n: (n, 0, 0)),
            scratch_shapes=[pltpu.VMEM((2, 2, Hq, Wq, hid), _F32),
                            pltpu.VMEM((OWp, hid), _F32)],
        ),
        compiler_params=_mosaic_params(),
    )(*args)
    return out[:, :OW, :].reshape(N, Ho, Wo, Cout)


# ------------------------- decoder depthwise 3x3 (s1) -----------------------

def _dw_kernel(x_ref, w_ref, s_ref, b_ref, o_ref, *, act):
    Ho, Wo, C = o_ref.shape[1], o_ref.shape[2], o_ref.shape[3]
    acc = jnp.zeros((Ho, Wo, C), jnp.float32)
    for kw in range(3):
        v = x_ref[0, :, kw:kw + Wo, :]              # (Hp, Wo, C), loaded once per kw
        for kh in range(3):
            acc = acc + v[kh:kh + Ho] * w_ref[kh * 3 + kw, :]
    y = _apply_act(acc * s_ref[0, :] + b_ref[0, :], act)
    o_ref[0] = y.astype(o_ref.dtype)


def dw_conv3x3(x, w_9c, scale, bias, act="none", padding=1):
    N, H, W, C = x.shape
    xp = jnp.pad(x, ((0, 0), (padding, padding), (padding, padding), (0, 0)))
    Hp, Wp = H + 2 * padding, W + 2 * padding
    Ho, Wo = Hp - 2, Wp - 2
    return pl.pallas_call(
        functools.partial(_dw_kernel, act=act),
        out_shape=jax.ShapeDtypeStruct((N, Ho, Wo, C), _F32),
        grid_spec=pltpu.PrefetchScalarGridSpec(
            num_scalar_prefetch=0,
            grid=(N,),
            in_specs=[
                pl.BlockSpec((1, Hp, Wp, C), lambda n: (n, 0, 0, 0)),
                pl.BlockSpec((9, C), lambda n: (0, 0)),
                pl.BlockSpec((1, C), lambda n: (0, 0)),
                pl.BlockSpec((1, C), lambda n: (0, 0)),
            ],
            out_specs=pl.BlockSpec((1, Ho, Wo, C), lambda n: (n, 0, 0, 0)),
        ),
        compiler_params=_mosaic_params(),
    )(xp, w_9c, scale.reshape(1, C), bias.reshape(1, C))


# ------------------ depthwise ConvTranspose2d k=2 s=2 + BN + ReLU -----------

def _up_kernel(x_ref, w_ref, s_ref, b_ref, o_ref):
    """Writes the interleaved (H, 2, W, 2C) layout directly (free reshape to (2H,2W,C))."""
    x = x_ref[0]                                    # (H, W, C)
    for a in range(2):
        cols = []
        for b in range(2):
            y = x * w_ref[2 * a + b, :]
            cols.append(jnp.maximum(y * s_ref[0, :] + b_ref[0, :], 0.0))
        o_ref[0, :, a, :, :] = jnp.concatenate(cols, axis=-1).astype(o_ref.dtype)


def up_conv2x2_dw(x, w_4c, scale, bias):
    N, H, W, C = x.shape
    y = pl.pallas_call(
        _up_kernel,
        out_shape=jax.ShapeDtypeStruct((N, H, 2, W, 2 * C), _F32),
        grid_spec=pltpu.PrefetchScalarGridSpec(
            num_scalar_prefetch=0,
            grid=(N,),
            in_specs=[
                pl.BlockSpec((1, H, W, C), lambda n: (n, 0, 0, 0)),
                pl.BlockSpec((4, C), lambda n: (0, 0)),
                pl.BlockSpec((1, C), lambda n: (0, 0)),
                pl.BlockSpec((1, C), lambda n: (0, 0)),
            ],
            out_specs=pl.BlockSpec((1, H, 2, W, 2 * C), lambda n: (n, 0, 0, 0, 0)),
        ),
        compiler_params=_mosaic_params(),
    )(x, w_4c, scale.reshape(1, C), bias.reshape(1, C))
    # (N, H, 2, W, 2C) is bit-identical in memory to (N, 2H, 2W, C): contiguous reshape
    return y.reshape(N, 2 * H, 2 * W, C)


# ------------------------------------ stem ----------------------------------

def stem_conv3x3_s2(x, w_27o, scale, bias):
    # TODO(synk): im2col for this single 3-channel 3x3-s2 conv stays in XLA (negligible).
    N, H, W, _ = x.shape
    xp = jnp.pad(x, ((0, 0), (1, 1), (1, 1), (0, 0)))
    Ho, Wo = H // 2, W // 2
    cols = [xp[:, kh:kh + 2 * Ho - 1:2, kw:kw + 2 * Wo - 1:2, :]
            for kh in range(3) for kw in range(3)]
    patches = jnp.concatenate(cols, axis=-1)        # (N, Ho, Wo, 27), order (kh, kw, c)
    y = pw_conv(patches.reshape(N * Ho * Wo, 27), w_27o, scale, bias, "relu6")
    return y.reshape(N, Ho, Wo, w_27o.shape[1])


# --------------------------------- parameters -------------------------------

class KeyGen:
    def __init__(self, seed):
        self._key = jax.random.PRNGKey(seed)

    def __call__(self):
        self._key, sub = jax.random.split(self._key)
        return sub


def kaiming_normal(kg, shape):
    fan_in = 1
    for d in shape[1:]:
        fan_in *= d
    std = math.sqrt(2.0 / fan_in)
    return (std * jax.random.normal(kg(), shape, dtype=_F32)).astype(_F32)


def bn_identity(c):
    scale = jnp.full((c,), 1.0 / math.sqrt(1.0 + BN_EPS), dtype=_F32)
    bias = jnp.zeros((c,), dtype=_F32)
    return scale, bias


def init_inverted_residual(kg, cin, cout, stride, t):
    hid = cin * t
    p = {"stride": stride, "use_res": (stride == 1 and cin == cout), "expand": None}
    if t != 1:
        w = kaiming_normal(kg, (hid, cin, 1, 1))
        p["expand"] = (w.reshape(hid, cin).T, *bn_identity(hid))
    w = kaiming_normal(kg, (hid, 1, 3, 3))
    p["dw"] = (w.reshape(hid, 9).T, *bn_identity(hid))
    w = kaiming_normal(kg, (cout, hid, 1, 1))
    p["proj"] = (w.reshape(cout, hid).T, *bn_identity(cout))
    return p


def init_encoder(kg):
    # TODO(synk): mobilenet_v2(pretrained=True) weights cannot be downloaded here;
    #             encoder uses deterministic kaiming-normal init instead.
    params = {}
    w = kaiming_normal(kg, (32, 3, 3, 3))
    params["stem_w"] = jnp.transpose(w, (2, 3, 1, 0)).reshape(27, 32)
    params["stem_s"], params["stem_b"] = bn_identity(32)
    cfg = [(1, 16, 1, 1), (6, 24, 2, 2), (6, 32, 3, 2), (6, 64, 4, 2),
           (6, 96, 3, 1), (6, 160, 3, 2), (6, 320, 1, 1)]
    blocks = []
    cin = 32
    for t, c, n, s in cfg:
        for i in range(n):
            blocks.append(init_inverted_residual(kg, cin, c, s if i == 0 else 1, t))
            cin = c
    params["blocks"] = blocks
    w = kaiming_normal(kg, (1280, 320, 1, 1))
    params["head_w"] = w.reshape(1280, 320).T
    params["head_s"], params["head_b"] = bn_identity(1280)
    return params


def init_decoder(kg, cin, cout):
    p = {}
    # up[0]: ConvTranspose2d(cin, cin, 2, 2, groups=cin), weight (cin, 1, 2, 2)
    w = kaiming_normal(kg, (cin, 1, 2, 2))
    p["up0"] = (w.reshape(cin, 4).T, *bn_identity(cin))
    # up[3]: ConvTranspose2d(cin, cin, 1, 1), weight (cin, cin, 1, 1): y_o = sum_i x_i W[i,o]
    w = kaiming_normal(kg, (cin, cin, 1, 1))
    p["up3"] = (w.reshape(cin, cin), *bn_identity(cin))
    # conv[0]: Conv2d(cin, cout, 1)
    w = kaiming_normal(kg, (cout, cin, 1, 1))
    p["c0"] = (w.reshape(cout, cin).T, *bn_identity(cout))
    # conv[3]: Conv2d(cout, cout, 3, pad=2, groups=cout)
    w = kaiming_normal(kg, (cout, 1, 3, 3))
    p["c3"] = (w.reshape(cout, 9).T, *bn_identity(cout))
    # conv[6]: Conv2d(cout, cout, 1) -- no BN, then ReLU
    w = kaiming_normal(kg, (cout, cout, 1, 1))
    p["c6"] = (w.reshape(cout, cout).T, jnp.ones((cout,), _F32), jnp.zeros((cout,), _F32))
    return p


def init_model(seed=0):
    kg = KeyGen(seed)
    return {
        "encoder": init_encoder(kg),
        "dec1": init_decoder(kg, 1280, 640),
        "dec2": init_decoder(kg, 640, 320),
        "dec3": init_decoder(kg, 320, 160),
        "sal_w": kaiming_normal(kg, (1, 160, 1, 1)).reshape(1, 160).T,
        "sal_b": jnp.zeros((1,), _F32),
    }


# ----------------------------------- forward --------------------------------

def run_inverted_residual(x, p):
    if p["stride"] == 1:
        return fused_ir_s1(x, p)
    return fused_ir_s2(x, p)


def run_encoder(x, params):
    x = stem_conv3x3_s2(x, params["stem_w"], params["stem_s"], params["stem_b"])
    for bp in params["blocks"]:
        x = run_inverted_residual(x, bp)
    return conv1x1(x, params["head_w"], params["head_s"], params["head_b"], "relu6")


def run_decoder(x, p):
    w, s, b = p["up0"]
    x = up_conv2x2_dw(x, w, s, b)                            # ConvT 2x2 dw + BN + ReLU
    w, s, b = p["up3"]
    x = conv1x1(x, w, s, b, "relu")                          # ConvT 1x1 + BN + ReLU
    w, s, b = p["c0"]
    x = conv1x1(x, w, s, b, "relu")                          # 1x1 + BN + ReLU
    w, s, b = p["c3"]
    x = dw_conv3x3(x, w, s, b, "relu", padding=2)            # 3x3 dw pad=2 + BN + ReLU
    w, s, b = p["c6"]
    x = conv1x1(x, w, s, b, "relu")                          # 1x1 + ReLU
    return x


def model_forward(x_nchw, params):
    x = jnp.transpose(x_nchw, (0, 2, 3, 1)).astype(_F32)     # NCHW -> NHWC
    x = run_encoder(x, params["encoder"])
    x = run_decoder(x, params["dec1"])
    x = run_decoder(x, params["dec2"])
    x = run_decoder(x, params["dec3"])
    sal = conv1x1(x, params["sal_w"], jnp.ones((1,), _F32), params["sal_b"], "relu")
    return jnp.transpose(sal, (0, 3, 1, 2))                  # NHWC -> NCHW


if __name__ == "__main__":
    params = init_model(0)
    x = jax.random.normal(jax.random.PRNGKey(0), (2, 3, 32, 32), dtype=_F32)
    out = model_forward(x, params)
    out = jax.block_until_ready(out)
    assert out.shape == (2, 1, 22, 22), out.shape
    assert bool(jnp.all(jnp.isfinite(out)))
    print("KERNEL_OK")
</pallas_src>

<mosaic_0001>
module attributes {stable_mosaic.version = 11 : i64} {
  func.func @_pw_kernel(%arg0: i32, %arg1: memref<256x27xf32, #tpu.memory_space<vmem>>, %arg2: memref<27x32xf32, #tpu.memory_space<vmem>>, %arg3: memref<1x32xf32, #tpu.memory_space<vmem>>, %arg4: memref<1x32xf32, #tpu.memory_space<vmem>>, %arg5: memref<256x32xf32, #tpu.memory_space<vmem>>) attributes {dimension_semantics = [#tpu.dimension_semantics<parallel>], iteration_bounds = array<i64: 2>, scalar_prefetch = 0 : i64, scratch_operands = 0 : i64, tpu.core_type = #tpu.core_type<tc>, window_params = [{transform_indices = @transform_0, window_bounds = array<i64: 256, 27>}, {pipeline_mode = #tpu.pipeline_mode<synchronous>, transform_indices = @transform_1, window_bounds = array<i64: 27, 32>}, {pipeline_mode = #tpu.pipeline_mode<synchronous>, transform_indices = @transform_2, window_bounds = array<i64: 1, 32>}, {pipeline_mode = #tpu.pipeline_mode<synchronous>, transform_indices = @transform_3, window_bounds = array<i64: 1, 32>}, {transform_indices = @transform_4, window_bounds = array<i64: 256, 32>}]} {
    %c0 = arith.constant 0 : index
    %c0_0 = arith.constant 0 : index
    %0 = vector.load %arg1[%c0, %c0_0] : memref<256x27xf32, #tpu.memory_space<vmem>>, vector<256x27xf32>
    %c0_1 = arith.constant 0 : index
    %c0_2 = arith.constant 0 : index
    %1 = vector.load %arg2[%c0_1, %c0_2] : memref<27x32xf32, #tpu.memory_space<vmem>>, vector<27x32xf32>
    %cst = arith.constant dense<0.000000e+00> : vector<256x32xf32>
    %2 = tpu.matmul %0, %1, %cst {dimension_numbers = #tpu.dot_dimension_numbers<[1], [0], [0], [1], [0, 0, 1, 1], [], []>} : vector<256x27xf32>, vector<27x32xf32>, vector<256x32xf32> -> vector<256x32xf32>
    %c0_3 = arith.constant 0 : index
    %c0_4 = arith.constant 0 : index
    %3 = vector.load %arg3[%c0_3, %c0_4] : memref<1x32xf32, #tpu.memory_space<vmem>>, vector<1x32xf32>
    %4 = vector.broadcast %3 : vector<1x32xf32> to vector<256x32xf32>
    %5 = arith.mulf %2, %4 : vector<256x32xf32>
    %c0_5 = arith.constant 0 : index
    %c0_6 = arith.constant 0 : index
    %6 = vector.load %arg4[%c0_5, %c0_6] : memref<1x32xf32, #tpu.memory_space<vmem>>, vector<1x32xf32>
    %7 = vector.broadcast %6 : vector<1x32xf32> to vector<256x32xf32>
    %8 = arith.addf %5, %7 : vector<256x32xf32>
    %cst_7 = arith.constant 0.000000e+00 : f32
    %cst_8 = arith.constant 6.000000e+00 : f32
    %9 = vector.broadcast %cst_7 : f32 to vector<256x32xf32>
    %10 = arith.maximumf %9, %8 : vector<256x32xf32>
    %11 = vector.broadcast %cst_8 : f32 to vector<256x32xf32>
    %12 = arith.minimumf %11, %10 : vector<256x32xf32>
    %c0_9 = arith.constant 0 : index
    %c0_10 = arith.constant 0 : index
    %13 = vector.load %arg5[%c0_9, %c0_10] : memref<256x32xf32, #tpu.memory_space<vmem>>, vector<256x32xf32>
    tpu.vector_store %arg5[%c0_9, %c0_10], %12 {strides = array<i32>} : memref<256x32xf32, #tpu.memory_space<vmem>>, vector<256x32xf32>,
    return
  }
  func.func @transform_0(%arg0: i32) -> (i32, i32) {
    %c0_i32 = arith.constant 0 : i32
    %c0_i32_0 = arith.constant 0 : i32
    return %arg0, %c0_i32 : i32, i32
  }
  func.func @transform_1(%arg0: i32) -> (i32, i32) {
    %c0_i32 = arith.constant 0 : i32
    %c0_i32_0 = arith.constant 0 : i32
    %c0_i32_1 = arith.constant 0 : i32
    return %c0_i32, %c0_i32_0 : i32, i32
  }
  func.func @transform_2(%arg0: i32) -> (i32, i32) {
    %c0_i32 = arith.constant 0 : i32
    %c0_i32_0 = arith.constant 0 : i32
    %c0_i32_1 = arith.constant 0 : i32
    return %c0_i32, %c0_i32_0 : i32, i32
  }
  func.func @transform_3(%arg0: i32) -> (i32, i32) {
    %c0_i32 = arith.constant 0 : i32
    %c0_i32_0 = arith.constant 0 : i32
    %c0_i32_1 = arith.constant 0 : i32
    return %c0_i32, %c0_i32_0 : i32, i32
  }
  func.func @transform_4(%arg0: i32) -> (i32, i32) {
    %c0_i32 = arith.constant 0 : i32
    %c0_i32_0 = arith.constant 0 : i32
    return %arg0, %c0_i32 : i32, i32
  }
}

</mosaic_0001>

<bundles_post_ra>
// kernel: tpu_custom_call.1
= control target key start
LH: loop header
LB: loop body
LE: loop exit
PB: predicated region body
PF: predicated region fallthrough
CT: control target
= control target key end

     0   :  { %s989_s15 = smov 0   ;;  %s1231_s0 = inlined_call_operand.vmem [shape: f32[512,27], index: 0, kind: input, shape index: {}]   ;;  %s1232_s1 = inlined_call_operand.vmem [shape: f32[27,32], index: 1, kind: input, shape index: {}]   ;;  %s1233_s2 = inlined_call_operand.vmem [shape: f32[1,32], index: 2, kind: input, shape index: {}]   ;;  %s1234_s3 = inlined_call_operand.vmem [shape: f32[1,32], index: 3, kind: input, shape index: {}]   ;;  %s1235_s4 = inlined_call_operand.vmem [shape: f32[512,32], index: 4, kind: output, shape index: {}]  }
   0x1 LB: > { %s794_s16 = sadd.s32 4294967295, %s961_s15   ;;  %p798_p0 = scmp.ge.s32.totalorder %s961_s15, 1  ;;  %s961_s15 = sphi %s989_s15, %s14_s15  }
   0x2   : > { %p163_p1 = scmp.lt.s32.totalorder %s961_s15, 3 }
   0x4   : > { %p164_p2 = pnand %p798_p0, %p163_p1 }
   0x5   : > { %v233_v0 = vld [vmem:[%s1232_s1] sm:$0xff] (!%p164_p2)  ;;  %v234_v1 = vld [vmem:[%s1232_s1 + $0x8] sm:$0xff] (!%p164_p2)  ;;  %v235_v2 = vld [vmem:[%s1232_s1 + $0x10] sm:$0xff] (!%p164_p2)  ;;  %vm334_vm0 = vcmask (!%p164_p2), 1042432   ;;  %s799_s23 = sshll.u32 (!%p164_p2), %s794_s16, 5  ;;  %vm963_vm1 = vmmov (!%p164_p2), 1  }
   0x6   : > { %167 = sbr.rel (%p164_p2) target bundleno = 269 (0x10d), region = 36  ;;  %v932_v3 = vpack.c.bf16 (!%p164_p2), %v234_v1, %v233_v0  ;;  %v236_v4 = vld [vmem:[%s1232_s1 + $0x18] sm:$0x7] (!%p164_p2)  ;;  %p190_p3 = scmp.lt.s32.totalorder (!%p164_p2), %s799_s23, 63  ;;  %vm937_vm2 = vmpackc.low (!%p164_p2), %vm334_vm0, %vm963_vm1  ;;  %vm237_vm3 = vcmask (!%p164_p2), 220160   ;;  %vm705_vm4 = vcmask (!%p164_p2), 261120  }
   0x7   : > { %v936_v5 = vpack.c.bf16 (!%p164_p2), %v236_v4, %v235_v2  ;;  %v1086_v38 = vld [vmem:[%s1233_s2] ss:$0 sm:$0xff] (!%p164_p2) }
   0x8   : > { %933 = vmatprep.subr.bf16.mxu0 (!%p164_p2), %v932_v3  ;;  %942 = vmatprep.subr.bf16.mxu1 (!%p164_p2), %v932_v3  ;;  %v1091_v40 = vld [vmem:[%s1234_s3] ss:$0 sm:$0xff] (!%p164_p2) }
   0x9   : > { %935 = vmatpush3.bf16.msra.mxu0 (!%p164_p2), %v932_v3  ;;  %944 = vmatpush3.bf16.msra.mxu1 (!%p164_p2), %v932_v3 }
   0xa   : > { %938 = vmatprep.subr.msk.bf16.mxu0 (!%p164_p2), %vm937_vm2, %v936_v5  ;;  %943 = vmatprep.subr.msk.bf16.mxu1 (!%p164_p2), %vm937_vm2, %v936_v5 }
   0xd   : > { %s1237_s23 = smov (!%p190_p3, %s799_s23), 63  ;;  %941 = vmatpush3.bf16.msk.msra.mxu0 %vm937_vm2, %v936_v5  ;;  %945 = vmatpush3.bf16.msk.msra.mxu1 %vm937_vm2, %v936_v5 }
   0xe   : > { %s800_s26 = sshll.u32 %s1237_s23, 3 }
   0xf   : > { %s1017_s29 = scalar_lea.vmem %s1231_s0, %s800_s26  ;;  %s1108_s10 = scalar_lea.vmem %s1235_s4, %s800_s26 }
  0x10   : > { %v201_v6 = vld [vmem:[%s1017_s29] sm:$0xff]  ;;  %v202_v8 = vld [vmem:[%s1017_s29 + $0x8] sm:$0xff]  ;;  %v203_v10 = vld [vmem:[%s1017_s29 + $0x10] sm:$0xff] }
  0x11   : > { %v217_v7 = vld [vmem:[%s1017_s29 + $0x80] sm:$0xff]  ;;  %v218_v9 = vld [vmem:[%s1017_s29 + $0x88] sm:$0xff]  ;;  %884 = vmatprep.mubr.msk.f32.mxu0 %vm237_vm3, %v201_v6  ;;  %v219_v11 = vld [vmem:[%s1017_s29 + $0x90] sm:$0xff] }
  0x12   : > { %908 = vmatprep.mubr.msk.f32.mxu1 %vm237_vm3, %v217_v7  ;;  %885 = vmatmul.mubr.msk.f32.vlgmr.msra.gmra.mrb[0].mxu0 %vm237_vm3, %v202_v8  ;;  %v204_v12 = vld [vmem:[%s1017_s29 + $0x18] sm:$0xff]  ;;  %v205_v14 = vld [vmem:[%s1017_s29 + $0x20] sm:$0xff]  ;;  %v206_v16 = vld [vmem:[%s1017_s29 + $0x28] sm:$0xff] }
  0x13   : > { %909 = vmatmul.mubr.msk.f32.vlgmr.msra.gmra.mrb[0].mxu1 %vm237_vm3, %v218_v9  ;;  %887 = vmatprep.mubr.msk.f32.mxu0 %vm237_vm3, %v203_v10  ;;  %v220_v13 = vld [vmem:[%s1017_s29 + $0x98] sm:$0xff]  ;;  %v221_v15 = vld [vmem:[%s1017_s29 + $0xa0] sm:$0xff]  ;;  %v222_v17 = vld [vmem:[%s1017_s29 + $0xa8] sm:$0xff] }
  0x14   : > { %911 = vmatprep.mubr.msk.f32.mxu1 %vm237_vm3, %v219_v11  ;;  %v207_v18 = vld [vmem:[%s1017_s29 + $0x30] sm:$0xff]  ;;  %v208_v20 = vld [vmem:[%s1017_s29 + $0x38] sm:$0xff]  ;;  %v209_v22 = vld [vmem:[%s1017_s29 + $0x40] sm:$0xff] }
  0x15   : > { %v223_v19 = vld [vmem:[%s1017_s29 + $0xb0] sm:$0xff]  ;;  %v224_v21 = vld [vmem:[%s1017_s29 + $0xb8] sm:$0xff]  ;;  %v225_v23 = vld [vmem:[%s1017_s29 + $0xc0] sm:$0xff] }
  0x16   : > { %888 = vmatmul.mubr.msk.f32.gmra.mrb[2].mxu0 %vm237_vm3, %v204_v12  ;;  %v210_v24 = vld [vmem:[%s1017_s29 + $0x48] sm:$0xff]  ;;  %v211_v26 = vld [vmem:[%s1017_s29 + $0x50] sm:$0xff]  ;;  %v212_v28 = vld [vmem:[%s1017_s29 + $0x58] sm:$0xff] }
  0x17   : > { %912 = vmatmul.mubr.msk.f32.gmra.mrb[2].mxu1 %vm237_vm3, %v220_v13  ;;  %890 = vmatprep.mubr.msk.f32.mxu0 %vm237_vm3, %v205_v14  ;;  %v226_v25 = vld [vmem:[%s1017_s29 + $0xc8] sm:$0xff]  ;;  %v227_v27 = vld [vmem:[%s1017_s29 + $0xd0] sm:$0xff]  ;;  %v228_v29 = vld [vmem:[%s1017_s29 + $0xd8] sm:$0xff] }
  0x18   : > { %914 = vmatprep.mubr.msk.f32.mxu1 %vm237_vm3, %v221_v15  ;;  %v213_v30 = vld [vmem:[%s1017_s29 + $0x60] sm:$0xff]  ;;  %v214_v32 = vld [vmem:[%s1017_s29 + $0x68] sm:$0xff]  ;;  %v215_v34 = vld [vmem:[%s1017_s29 + $0x70] sm:$0xff] }
  0x19   : > { %v229_v31 = vld [vmem:[%s1017_s29 + $0xe0] sm:$0xff]  ;;  %v230_v33 = vld [vmem:[%s1017_s29 + $0xe8] sm:$0xff]  ;;  %v231_v35 = vld [vmem:[%s1017_s29 + $0xf0] sm:$0xff] }
  0x1a   : > { %891 = vmatmul.mubr.msk.f32.gmra.mrb[4].mxu0 %vm237_vm3, %v206_v16  ;;  %v216_v36 = vld [vmem:[%s1017_s29 + $0x78] sm:$0xff] }
  0x1b   : > { %915 = vmatmul.mubr.msk.f32.gmra.mrb[4].mxu1 %vm237_vm3, %v222_v17  ;;  %893 = vmatprep.mubr.msk.f32.mxu0 %vm237_vm3, %v207_v18  ;;  %v232_v37 = vld [vmem:[%s1017_s29 + $0xf8] sm:$0xff] }
  0x1c   : > { %917 = vmatprep.mubr.msk.f32.mxu1 %vm237_vm3, %v223_v19 }
  0x1e   : > { %894 = vmatmul.mubr.msk.f32.gmra.mrb[6].mxu0 %vm237_vm3, %v208_v20 }
  0x1f   : > { %918 = vmatmul.mubr.msk.f32.gmra.mrb[6].mxu1 %vm237_vm3, %v224_v21  ;;  %896 = vmatprep.mubr.msk.f32.mxu0 %vm237_vm3, %v209_v22 }
  0x20   : > { %920 = vmatprep.mubr.msk.f32.mxu1 %vm237_vm3, %v225_v23 }
  0x22   : > { %897 = vmatmul.mubr.msk.f32.gmra.mrb[8].mxu0 %vm237_vm3, %v210_v24 }
  0x23   : > { %921 = vmatmul.mubr.msk.f32.gmra.mrb[8].mxu1 %vm237_vm3, %v226_v25  ;;  %899 = vmatprep.mubr.msk.f32.mxu0 %vm237_vm3, %v211_v26 }
  0x24   : > { %923 = vmatprep.mubr.msk.f32.mxu1 %vm237_vm3, %v227_v27 }
  0x26   : > { %900 = vmatmul.mubr.msk.f32.gmra.mrb[10].mxu0 %vm237_vm3, %v212_v28 }
  0x27   : > { %924 = vmatmul.mubr.msk.f32.gmra.mrb[10].mxu1 %vm237_vm3, %v228_v29  ;;  %902 = vmatprep.mubr.msk.f32.mxu0 %vm237_vm3, %v213_v30 }
  0x28   : > { %926 = vmatprep.mubr.msk.f32.mxu1 %vm237_vm3, %v229_v31 }
  0x2a   : > { %903 = vmatmul.mubr.msk.f32.gmra.mrb[12].mxu0 %vm237_vm3, %v214_v32 }
  0x2b   : > { %927 = vmatmul.mubr.msk.f32.gmra.mrb[12].mxu1 %vm237_vm3, %v230_v33  ;;  %905 = vmatprep.mubr.msk.f32.mxu0 %vm237_vm3, %v215_v34 }
  0x2c   : > { %929 = vmatprep.mubr.msk.f32.mxu1 %vm237_vm3, %v231_v35 }
  0x2e   : > { %906 = vmatmul.mubr.msk.f32.gmra.mrb[14].mxu0 %vm237_vm3, %v216_v36 }
  0x2f   : > { %930 = vmatmul.mubr.msk.f32.gmra.mrb[14].mxu1 %vm237_vm3, %v232_v37 }
  0xe5   : > { %v886_v39 = vpop.f32.mrb[0].mxu0 }
  0xe6   : > { %v910_v41 = vpop.f32.mrb[0].mxu1  ;;  %v571_v42 = vmul.f32 %v886_v39, %v1086_v38  ;;  %v404_v44 = vpop.f32.mrb[1].mxu0 }
  0xe7   : > { %v587_v43 = vmul.f32 %v910_v41, %v1086_v38  ;;  %v484_v45 = vpop.f32.mrb[1].mxu1  ;;  %v570_v46 = vmul.f32 %v1086_v38, %v404_v44 }
  0xe8   : > { %v586_v47 = vmul.f32 %v1086_v38, %v484_v45  ;;  %v610_v48 = vadd.f32 %v1091_v40, %v571_v42 }
  0xe9   : > { %v626_v49 = vadd.f32 %v1091_v40, %v587_v43  ;;  %v609_v50 = vadd.f32 %v1091_v40, %v570_v46  ;;  %v889_v52 = vpop.f32.mrb[2].mxu0 }
  0xea   : > { %v625_v51 = vadd.f32 %v1091_v40, %v586_v47  ;;  %v913_v53 = vpop.f32.mrb[2].mxu1  ;;  %v642_v54 = vmax.f32 %v610_v48, 0.0  ;;  %v573_v56 = vmul.f32 %v889_v52, %v1086_v38  ;;  %v414_v58 = vpop.f32.mrb[3].mxu0 }
  0xeb   : > { %v658_v55 = vmax.f32 %v626_v49, 0.0  ;;  %v589_v57 = vmul.f32 %v913_v53, %v1086_v38  ;;  %v494_v59 = vpop.f32.mrb[3].mxu1  ;;  %v641_v60 = vmax.f32 %v609_v50, 0.0  ;;  %v572_v62 = vmul.f32 %v1086_v38, %v414_v58 }
  0xec   : > { %v657_v61 = vmax.f32 %v625_v51, 0.0  ;;  %v588_v63 = vmul.f32 %v1086_v38, %v494_v59  ;;  %v674_v0 = vmin.f32 %v642_v54, 6.0  ;;  %v612_v2 = vadd.f32 %v1091_v40, %v573_v56 }
  0xed   : > { %v690_v1 = vmin.f32 %v658_v55, 6.0  ;;  %v628_v3 = vadd.f32 %v1091_v40, %v589_v57  ;;  %v673_v4 = vmin.f32 %v641_v60, 6.0  ;;  %v611_v6 = vadd.f32 %v1091_v40, %v572_v62  ;;  %v892_v8 = vpop.f32.mrb[4].mxu0 }
  0xee   : > { %v689_v5 = vmin.f32 %v657_v61, 6.0  ;;  %v627_v7 = vadd.f32 %v1091_v40, %v588_v63  ;;  %v916_v9 = vpop.f32.mrb[4].mxu1  ;;  %707 = vst.msk [vmem:[%s1108_s10 + $0x8] sm:$0xff] %vm705_vm4, %v674_v0  ;;  %v644_v10 = vmax.f32 %v612_v2, 0.0  ;;  %v575_v12 = vmul.f32 %v892_v8, %v1086_v38  ;;  %v424_v14 = vpop.f32.mrb[5].mxu0 }
  0xef   : > { %723 = vst.msk [vmem:[%s1108_s10 + $0x88] sm:$0xff] %vm705_vm4, %v690_v1  ;;  %v660_v11 = vmax.f32 %v628_v3, 0.0  ;;  %v591_v13 = vmul.f32 %v916_v9, %v1086_v38  ;;  %v504_v15 = vpop.f32.mrb[5].mxu1  ;;  %706 = vst.msk [vmem:[%s1108_s10] sm:$0xff] %vm705_vm4, %v673_v4  ;;  %v643_v16 = vmax.f32 %v611_v6, 0.0  ;;  %v574_v18 = vmul.f32 %v1086_v38, %v424_v14 }
  0xf0   : > { %722 = vst.msk [vmem:[%s1108_s10 + $0x80] sm:$0xff] %vm705_vm4, %v689_v5  ;;  %v659_v17 = vmax.f32 %v627_v7, 0.0  ;;  %v590_v19 = vmul.f32 %v1086_v38, %v504_v15  ;;  %v676_v20 = vmin.f32 %v644_v10, 6.0  ;;  %v614_v22 = vadd.f32 %v1091_v40, %v575_v12 }
  0xf1   : > { %v692_v21 = vmin.f32 %v660_v11, 6.0  ;;  %v630_v23 = vadd.f32 %v1091_v40, %v591_v13  ;;  %v675_v24 = vmin.f32 %v643_v16, 6.0  ;;  %v613_v26 = vadd.f32 %v1091_v40, %v574_v18  ;;  %v895_v28 = vpop.f32.mrb[6].mxu0 }
  0xf2   : > { %v691_v25 = vmin.f32 %v659_v17, 6.0  ;;  %v629_v27 = vadd.f32 %v1091_v40, %v590_v19  ;;  %v919_v29 = vpop.f32.mrb[6].mxu1  ;;  %709 = vst.msk [vmem:[%s1108_s10 + $0x18] sm:$0xff] %vm705_vm4, %v676_v20  ;;  %v646_v30 = vmax.f32 %v614_v22, 0.0  ;;  %v577_v32 = vmul.f32 %v895_v28, %v1086_v38  ;;  %v434_v34 = vpop.f32.mrb[7].mxu0 }
  0xf3   : > { %725 = vst.msk [vmem:[%s1108_s10 + $0x98] sm:$0xff] %vm705_vm4, %v692_v21  ;;  %v662_v31 = vmax.f32 %v630_v23, 0.0  ;;  %v593_v33 = vmul.f32 %v919_v29, %v1086_v38  ;;  %v514_v35 = vpop.f32.mrb[7].mxu1  ;;  %708 = vst.msk [vmem:[%s1108_s10 + $0x10] sm:$0xff] %vm705_vm4, %v675_v24  ;;  %v645_v36 = vmax.f32 %v613_v26, 0.0  ;;  %v576_v39 = vmul.f32 %v1086_v38, %v434_v34 }
  0xf4   : > { %724 = vst.msk [vmem:[%s1108_s10 + $0x90] sm:$0xff] %vm705_vm4, %v691_v25  ;;  %v661_v37 = vmax.f32 %v629_v27, 0.0  ;;  %v592_v41 = vmul.f32 %v1086_v38, %v514_v35  ;;  %v678_v42 = vmin.f32 %v646_v30, 6.0  ;;  %v616_v44 = vadd.f32 %v1091_v40, %v577_v32 }
  0xf5   : > { %v694_v43 = vmin.f32 %v662_v31, 6.0  ;;  %v632_v45 = vadd.f32 %v1091_v40, %v593_v33  ;;  %v677_v46 = vmin.f32 %v645_v36, 6.0  ;;  %v615_v48 = vadd.f32 %v1091_v40, %v576_v39  ;;  %v898_v50 = vpop.f32.mrb[8].mxu0 }
  0xf6   : > { %v693_v47 = vmin.f32 %v661_v37, 6.0  ;;  %v631_v49 = vadd.f32 %v1091_v40, %v592_v41  ;;  %v922_v51 = vpop.f32.mrb[8].mxu1  ;;  %711 = vst.msk [vmem:[%s1108_s10 + $0x28] sm:$0xff] %vm705_vm4, %v678_v42  ;;  %v648_v52 = vmax.f32 %v616_v44, 0.0  ;;  %v579_v54 = vmul.f32 %v898_v50, %v1086_v38  ;;  %v444_v56 = vpop.f32.mrb[9].mxu0 }
  0xf7   : > { %727 = vst.msk [vmem:[%s1108_s10 + $0xa8] sm:$0xff] %vm705_vm4, %v694_v43  ;;  %v664_v53 = vmax.f32 %v632_v45, 0.0  ;;  %v595_v55 = vmul.f32 %v922_v51, %v1086_v38  ;;  %v524_v57 = vpop.f32.mrb[9].mxu1  ;;  %710 = vst.msk [vmem:[%s1108_s10 + $0x20] sm:$0xff] %vm705_vm4, %v677_v46  ;;  %v647_v58 = vmax.f32 %v615_v48, 0.0  ;;  %v578_v60 = vmul.f32 %v1086_v38, %v444_v56 }
  0xf8   : > { %726 = vst.msk [vmem:[%s1108_s10 + $0xa0] sm:$0xff] %vm705_vm4, %v693_v47  ;;  %v663_v59 = vmax.f32 %v631_v49, 0.0  ;;  %v594_v61 = vmul.f32 %v1086_v38, %v524_v57  ;;  %v680_v62 = vmin.f32 %v648_v52, 6.0  ;;  %v618_v0 = vadd.f32 %v1091_v40, %v579_v54 }
  0xf9   : > { %v696_v63 = vmin.f32 %v664_v53, 6.0  ;;  %v634_v1 = vadd.f32 %v1091_v40, %v595_v55  ;;  %v679_v2 = vmin.f32 %v647_v58, 6.0  ;;  %v617_v4 = vadd.f32 %v1091_v40, %v578_v60  ;;  %v901_v6 = vpop.f32.mrb[10].mxu0 }
  0xfa   : > { %v695_v3 = vmin.f32 %v663_v59, 6.0  ;;  %v633_v5 = vadd.f32 %v1091_v40, %v594_v61  ;;  %v925_v7 = vpop.f32.mrb[10].mxu1  ;;  %713 = vst.msk [vmem:[%s1108_s10 + $0x38] sm:$0xff] %vm705_vm4, %v680_v62  ;;  %v650_v8 = vmax.f32 %v618_v0, 0.0  ;;  %v581_v10 = vmul.f32 %v901_v6, %v1086_v38  ;;  %v454_v12 = vpop.f32.mrb[11].mxu0 }
  0xfb   : > { %729 = vst.msk [vmem:[%s1108_s10 + $0xb8] sm:$0xff] %vm705_vm4, %v696_v63  ;;  %v666_v9 = vmax.f32 %v634_v1, 0.0  ;;  %v597_v11 = vmul.f32 %v925_v7, %v1086_v38  ;;  %v534_v13 = vpop.f32.mrb[11].mxu1  ;;  %712 = vst.msk [vmem:[%s1108_s10 + $0x30] sm:$0xff] %vm705_vm4, %v679_v2  ;;  %v649_v14 = vmax.f32 %v617_v4, 0.0  ;;  %v580_v16 = vmul.f32 %v1086_v38, %v454_v12 }
  0xfc   : > { %728 = vst.msk [vmem:[%s1108_s10 + $0xb0] sm:$0xff] %vm705_vm4, %v695_v3  ;;  %v665_v15 = vmax.f32 %v633_v5, 0.0  ;;  %v596_v17 = vmul.f32 %v1086_v38, %v534_v13  ;;  %v682_v18 = vmin.f32 %v650_v8, 6.0  ;;  %v620_v20 = vadd.f32 %v1091_v40, %v581_v10 }
  0xfd   : > { %v698_v19 = vmin.f32 %v666_v9, 6.0  ;;  %v636_v21 = vadd.f32 %v1091_v40, %v597_v11  ;;  %v681_v22 = vmin.f32 %v649_v14, 6.0  ;;  %v619_v24 = vadd.f32 %v1091_v40, %v580_v16  ;;  %v904_v26 = vpop.f32.mrb[12].mxu0 }
  0xfe   : > { %v697_v23 = vmin.f32 %v665_v15, 6.0  ;;  %v635_v25 = vadd.f32 %v1091_v40, %v596_v17  ;;  %v928_v27 = vpop.f32.mrb[12].mxu1  ;;  %715 = vst.msk [vmem:[%s1108_s10 + $0x48] sm:$0xff] %vm705_vm4, %v682_v18  ;;  %v652_v28 = vmax.f32 %v620_v20, 0.0  ;;  %v583_v30 = vmul.f32 %v904_v26, %v1086_v38  ;;  %v464_v32 = vpop.f32.mrb[13].mxu0 }
  0xff   : > { %731 = vst.msk [vmem:[%s1108_s10 + $0xc8] sm:$0xff] %vm705_vm4, %v698_v19  ;;  %v668_v29 = vmax.f32 %v636_v21, 0.0  ;;  %v599_v31 = vmul.f32 %v928_v27, %v1086_v38  ;;  %v544_v33 = vpop.f32.mrb[13].mxu1  ;;  %714 = vst.msk [vmem:[%s1108_s10 + $0x40] sm:$0xff] %vm705_vm4, %v681_v22  ;;  %v651_v34 = vmax.f32 %v619_v24, 0.0  ;;  %v582_v36 = vmul.f32 %v1086_v38, %v464_v32 }
 0x100   : > { %730 = vst.msk [vmem:[%s1108_s10 + $0xc0] sm:$0xff] %vm705_vm4, %v697_v23  ;;  %v667_v35 = vmax.f32 %v635_v25, 0.0  ;;  %v598_v37 = vmul.f32 %v1086_v38, %v544_v33  ;;  %v684_v39 = vmin.f32 %v652_v28, 6.0  ;;  %v622_v42 = vadd.f32 %v1091_v40, %v583_v30 }
 0x101   : > { %v700_v41 = vmin.f32 %v668_v29, 6.0  ;;  %v638_v43 = vadd.f32 %v1091_v40, %v599_v31  ;;  %v683_v44 = vmin.f32 %v651_v34, 6.0  ;;  %v621_v46 = vadd.f32 %v1091_v40, %v582_v36  ;;  %v907_v48 = vpop.f32.mrb[14].mxu0 }
 0x102   : > { %v699_v45 = vmin.f32 %v667_v35, 6.0  ;;  %v637_v47 = vadd.f32 %v1091_v40, %v598_v37  ;;  %v931_v49 = vpop.f32.mrb[14].mxu1  ;;  %717 = vst.msk [vmem:[%s1108_s10 + $0x58] sm:$0xff] %vm705_vm4, %v684_v39  ;;  %v654_v50 = vmax.f32 %v622_v42, 0.0  ;;  %v585_v52 = vmul.f32 %v907_v48, %v1086_v38  ;;  %v474_v54 = vpop.f32.mrb[15].mxu0 }
 0x103   : > { %733 = vst.msk [vmem:[%s1108_s10 + $0xd8] sm:$0xff] %vm705_vm4, %v700_v41  ;;  %v670_v51 = vmax.f32 %v638_v43, 0.0  ;;  %v601_v53 = vmul.f32 %v931_v49, %v1086_v38  ;;  %v554_v55 = vpop.f32.mrb[15].mxu1  ;;  %716 = vst.msk [vmem:[%s1108_s10 + $0x50] sm:$0xff] %vm705_vm4, %v683_v44  ;;  %v653_v56 = vmax.f32 %v621_v46, 0.0  ;;  %v584_v58 = vmul.f32 %v1086_v38, %v474_v54 }
 0x104   : > { %732 = vst.msk [vmem:[%s1108_s10 + $0xd0] sm:$0xff] %vm705_vm4, %v699_v45  ;;  %v669_v57 = vmax.f32 %v637_v47, 0.0  ;;  %v600_v59 = vmul.f32 %v1086_v38, %v554_v55  ;;  %v686_v60 = vmin.f32 %v654_v50, 6.0  ;;  %v624_v62 = vadd.f32 %v1091_v40, %v585_v52 }
 0x105   : > { %v702_v61 = vmin.f32 %v670_v51, 6.0  ;;  %v640_v63 = vadd.f32 %v1091_v40, %v601_v53  ;;  %v685_v0 = vmin.f32 %v653_v56, 6.0  ;;  %v623_v2 = vadd.f32 %v1091_v40, %v584_v58 }
 0x106   : > { %v701_v1 = vmin.f32 %v669_v57, 6.0  ;;  %v639_v3 = vadd.f32 %v1091_v40, %v600_v59  ;;  %719 = vst.msk [vmem:[%s1108_s10 + $0x68] sm:$0xff] %vm705_vm4, %v686_v60  ;;  %v656_v38 = vmax.f32 %v624_v62, 0.0 }
 0x107   : > { %735 = vst.msk [vmem:[%s1108_s10 + $0xe8] sm:$0xff] %vm705_vm4, %v702_v61  ;;  %v672_v4 = vmax.f32 %v640_v63, 0.0  ;;  %718 = vst.msk [vmem:[%s1108_s10 + $0x60] sm:$0xff] %vm705_vm4, %v685_v0  ;;  %v655_v5 = vmax.f32 %v623_v2, 0.0 }
 0x108   : > { %734 = vst.msk [vmem:[%s1108_s10 + $0xe0] sm:$0xff] %vm705_vm4, %v701_v1  ;;  %v671_v6 = vmax.f32 %v639_v3, 0.0  ;;  %v688_v7 = vmin.f32 %v656_v38, 6.0 }
 0x109   : > { %v704_v8 = vmin.f32 %v672_v4, 6.0  ;;  %v687_v9 = vmin.f32 %v655_v5, 6.0 }
 0x10a   : > { %v703_v10 = vmin.f32 %v671_v6, 6.0  ;;  %721 = vst.msk [vmem:[%s1108_s10 + $0x78] sm:$0xff] %vm705_vm4, %v688_v7 }
 0x10b   : > { %737 = vst.msk [vmem:[%s1108_s10 + $0xf8] sm:$0xff] %vm705_vm4, %v704_v8  ;;  %720 = vst.msk [vmem:[%s1108_s10 + $0x70] sm:$0xff] %vm705_vm4, %v687_v9 }
 0x10c   : > { %736 = vst.msk [vmem:[%s1108_s10 + $0xf0] sm:$0xff] %vm705_vm4, %v703_v10 }
 0x10d PF: > { %s14_s15 = sadd.s32 1, %s961_s15  }
 0x10e   : > { %p11_p4 = scmp.ge.s32.totalorder %s14_s15, 4  }
 0x110   :  { %13 = sbr.rel (!%p11_p4) target bundleno = 1 (0x1), region = 66 }

</bundles_post_ra>
